<compile_context>
chip_gen: v7x
topology: tpu7x:2x2x1
jax: 0.10.0
libtpu: 0.0.40
codegen_flags: <defaults>
</compile_context>

<pallas_src>
import jax
import jax.numpy as jnp
from jax.experimental import pallas as pl
from jax.experimental.pallas import tpu as pltpu

D_IN, H1, H2, D_OUT = 784, 128, 64, 10
K_PAD = 896    # 784 rounded up to a multiple of 128 (aligned K tiles / aligned x DMAs)
N_PAD = 128    # fc3 output padded to a full lane width (lane-dense stores)


def _round_up(x, m):
    return (x + m - 1) // m * m


def fnn_kernel(x_ref, w1_ref, b1_ref, w2_ref, b2_ref, w3_ref, b3_ref, o_ref):
    # fc1 + relu: bf16 MXU matmul, f32 accumulation; bias/ReLU in f32.
    h1 = jnp.dot(x_ref[...], w1_ref[...], preferred_element_type=jnp.float32)
    h1 = jnp.maximum(h1 + b1_ref[...], 0.0)
    # fc2 + relu
    h2 = jnp.dot(h1.astype(jnp.bfloat16), w2_ref[...],
                 preferred_element_type=jnp.float32)
    h2 = jnp.maximum(h2 + b2_ref[...], 0.0)
    # fc3 (no activation), written lane-dense into the 128-wide padded output.
    out = jnp.dot(h2.astype(jnp.bfloat16), w3_ref[...],
                  preferred_element_type=jnp.float32)
    o_ref[...] = (out + b3_ref[...]).astype(o_ref.dtype)


def _prepare_params(params):
    """Cast weights to bf16, zero-pad K (w1) and N (w3/b3) to aligned widths."""
    w1, b1, w2, b2, w3, b3 = params
    w1p = jnp.zeros((K_PAD, H1), jnp.bfloat16).at[:D_IN, :].set(w1.astype(jnp.bfloat16))
    w2p = w2.astype(jnp.bfloat16)
    w3p = jnp.zeros((H2, N_PAD), jnp.bfloat16).at[:, :D_OUT].set(w3.astype(jnp.bfloat16))
    b3p = jnp.zeros((1, N_PAD), jnp.float32).at[:, :D_OUT].set(b3)
    return w1p, b1.astype(jnp.float32), w2p, b2.astype(jnp.float32), w3p, b3p


def fnn_forward(x, params, *, tile_b=512):
    """x: (B, 1, 28, 28) or (B, 784) float32. Returns logits (B, 10) float32."""
    w1, b1, w2, b2, w3, b3 = _prepare_params(params)

    x2d = x.reshape(-1, D_IN)  # mirrors x.view(-1, 784)
    B = x2d.shape[0]

    # Tile size: keep a multiple of 16 (bf16 sublane packing), never larger than
    # needed for small batches; 512 default fits comfortably in v7x's 32 MiB
    # default scoped VMEM (x tile ~0.9 MB bf16, weights ~0.26 MB, out tile 0.25 MB).
    tile_b = min(tile_b, _round_up(B, 16))
    b_pad = _round_up(B, tile_b)

    xp = jnp.zeros((b_pad, K_PAD), jnp.bfloat16).at[:B, :D_IN].set(
        x2d.astype(jnp.bfloat16))

    num_tiles = b_pad // tile_b
    const = lambda shape: pl.BlockSpec(shape, lambda i: (0, 0))  # VMEM-resident

    flops = 2 * b_pad * (D_IN * H1 + H1 * H2 + H2 * D_OUT)
    bytes_accessed = (
        b_pad * K_PAD * 2                      # x (bf16)
        + K_PAD * H1 * 2 + H1 * H2 * 2 + H2 * N_PAD * 2  # weights (bf16)
        + (H1 + H2 + N_PAD) * 4                # biases (f32)
        + b_pad * N_PAD * 4                    # output (f32)
    )

    out = pl.pallas_call(
        fnn_kernel,
        out_shape=jax.ShapeDtypeStruct((b_pad, N_PAD), jnp.float32),
        grid=(num_tiles,),
        in_specs=[
            pl.BlockSpec((tile_b, K_PAD), lambda i: (i, 0)),  # x: tiled over batch
            const((K_PAD, H1)),
            const((1, H1)),
            const((H1, H2)),
            const((1, H2)),
            const((H2, N_PAD)),
            const((1, N_PAD)),
        ],
        out_specs=pl.BlockSpec((tile_b, N_PAD), lambda i: (i, 0)),
        compiler_params=pltpu.CompilerParams(
            dimension_semantics=("parallel",)),  # megacore sharding on v7x
        cost_estimate=pl.CostEstimate(
            flops=flops, transcendentals=0, bytes_accessed=bytes_accessed),
    )(xp, w1, b1, w2, b2, w3, b3)

    return out[:B, :D_OUT]


def init_params(key):
    """Deterministic init matching PyTorch nn.Linear shapes (stored transposed)."""
    def linear(key, fan_in, fan_out):
        kw, kb = jax.random.split(key)
        bound = 1.0 / jnp.sqrt(float(fan_in))
        w = jax.random.uniform(kw, (fan_in, fan_out), jnp.float32, -bound, bound)
        b = jax.random.uniform(kb, (1, fan_out), jnp.float32, -bound, bound)
        return w, b

    k1, k2, k3 = jax.random.split(key, 3)
    w1, b1 = linear(k1, D_IN, H1)
    w2, b2 = linear(k2, H1, H2)
    w3, b3 = linear(k3, H2, D_OUT)
    return (w1, b1, w2, b2, w3, b3)


def fnn_ref(x, params):
    """Pure-JAX f32 reference for correctness check."""
    w1, b1, w2, b2, w3, b3 = params
    x2d = x.reshape(-1, D_IN)
    h1 = jnp.maximum(x2d @ w1 + b1, 0.0)
    h2 = jnp.maximum(h1 @ w2 + b2, 0.0)
    return h2 @ w3 + b3


if __name__ == "__main__":
    key = jax.random.PRNGKey(0)
    k_params, k_x = jax.random.split(key)

    params = init_params(k_params)
    # Small MNIST-like batch: (B, 1, 28, 28) NCHW, flattened to (B, 784) inside.
    x = jax.random.normal(k_x, (8, 1, 28, 28), jnp.float32)

    out = fnn_forward(x, params)
    out = jax.block_until_ready(out)

    ref = fnn_ref(x, params)
    assert out.shape == (8, 10)
    # bf16 matmul inputs (f32 accumulation) vs f32 reference: loosened tolerance.
    assert jnp.allclose(out, ref, atol=1e-1, rtol=1e-1)

    print("KERNEL_OK")
</pallas_src>

<mosaic_0001>
module attributes {stable_mosaic.version = 11 : i64} {
  func.func @fnn_kernel(%arg0: i32, %arg1: memref<16x896xbf16, #tpu.memory_space<vmem>>, %arg2: memref<896x128xbf16, #tpu.memory_space<vmem>>, %arg3: memref<1x128xf32, #tpu.memory_space<vmem>>, %arg4: memref<128x64xbf16, #tpu.memory_space<vmem>>, %arg5: memref<1x64xf32, #tpu.memory_space<vmem>>, %arg6: memref<64x128xbf16, #tpu.memory_space<vmem>>, %arg7: memref<1x128xf32, #tpu.memory_space<vmem>>, %arg8: memref<16x128xf32, #tpu.memory_space<vmem>>) attributes {dimension_semantics = [#tpu.dimension_semantics<parallel>], iteration_bounds = array<i64: 1>, scalar_prefetch = 0 : i64, scratch_operands = 0 : i64, tpu.core_type = #tpu.core_type<tc>, window_params = [{transform_indices = @transform_0, window_bounds = array<i64: 16, 896>}, {pipeline_mode = #tpu.pipeline_mode<synchronous>, transform_indices = @transform_1, window_bounds = array<i64: 896, 128>}, {pipeline_mode = #tpu.pipeline_mode<synchronous>, transform_indices = @transform_2, window_bounds = array<i64: 1, 128>}, {pipeline_mode = #tpu.pipeline_mode<synchronous>, transform_indices = @transform_3, window_bounds = array<i64: 128, 64>}, {pipeline_mode = #tpu.pipeline_mode<synchronous>, transform_indices = @transform_4, window_bounds = array<i64: 1, 64>}, {pipeline_mode = #tpu.pipeline_mode<synchronous>, transform_indices = @transform_5, window_bounds = array<i64: 64, 128>}, {pipeline_mode = #tpu.pipeline_mode<synchronous>, transform_indices = @transform_6, window_bounds = array<i64: 1, 128>}, {transform_indices = @transform_7, window_bounds = array<i64: 16, 128>}]} {
    %c0 = arith.constant 0 : index
    %c0_0 = arith.constant 0 : index
    %0 = vector.load %arg1[%c0, %c0_0] : memref<16x896xbf16, #tpu.memory_space<vmem>>, vector<16x896xbf16>
    %c0_1 = arith.constant 0 : index
    %c0_2 = arith.constant 0 : index
    %1 = vector.load %arg2[%c0_1, %c0_2] : memref<896x128xbf16, #tpu.memory_space<vmem>>, vector<896x128xbf16>
    %cst = arith.constant dense<0.000000e+00> : vector<16x128xf32>
    %2 = tpu.matmul %0, %1, %cst {dimension_numbers = #tpu.dot_dimension_numbers<[1], [0], [0], [1], [0, 0, 1, 1], [], []>} : vector<16x896xbf16>, vector<896x128xbf16>, vector<16x128xf32> -> vector<16x128xf32>
    %c0_3 = arith.constant 0 : index
    %c0_4 = arith.constant 0 : index
    %3 = vector.load %arg3[%c0_3, %c0_4] : memref<1x128xf32, #tpu.memory_space<vmem>>, vector<1x128xf32>
    %4 = vector.broadcast %3 : vector<1x128xf32> to vector<16x128xf32>
    %5 = arith.addf %2, %4 : vector<16x128xf32>
    %cst_5 = arith.constant 0.000000e+00 : f32
    %6 = vector.broadcast %cst_5 : f32 to vector<16x128xf32>
    %7 = arith.maximumf %5, %6 : vector<16x128xf32>
    %8 = arith.truncf %7 : vector<16x128xf32> to vector<16x128xbf16>
    %c0_6 = arith.constant 0 : index
    %c0_7 = arith.constant 0 : index
    %9 = vector.load %arg4[%c0_6, %c0_7] : memref<128x64xbf16, #tpu.memory_space<vmem>>, vector<128x64xbf16>
    %cst_8 = arith.constant dense<0.000000e+00> : vector<16x64xf32>
    %10 = tpu.matmul %8, %9, %cst_8 {dimension_numbers = #tpu.dot_dimension_numbers<[1], [0], [0], [1], [0, 0, 1, 1], [], []>} : vector<16x128xbf16>, vector<128x64xbf16>, vector<16x64xf32> -> vector<16x64xf32>
    %c0_9 = arith.constant 0 : index
    %c0_10 = arith.constant 0 : index
    %11 = vector.load %arg5[%c0_9, %c0_10] : memref<1x64xf32, #tpu.memory_space<vmem>>, vector<1x64xf32>
    %12 = vector.broadcast %11 : vector<1x64xf32> to vector<16x64xf32>
    %13 = arith.addf %10, %12 : vector<16x64xf32>
    %cst_11 = arith.constant 0.000000e+00 : f32
    %14 = vector.broadcast %cst_11 : f32 to vector<16x64xf32>
    %15 = arith.maximumf %13, %14 : vector<16x64xf32>
    %16 = arith.truncf %15 : vector<16x64xf32> to vector<16x64xbf16>
    %c0_12 = arith.constant 0 : index
    %c0_13 = arith.constant 0 : index
    %17 = vector.load %arg6[%c0_12, %c0_13] : memref<64x128xbf16, #tpu.memory_space<vmem>>, vector<64x128xbf16>
    %cst_14 = arith.constant dense<0.000000e+00> : vector<16x128xf32>
    %18 = tpu.matmul %16, %17, %cst_14 {dimension_numbers = #tpu.dot_dimension_numbers<[1], [0], [0], [1], [0, 0, 1, 1], [], []>} : vector<16x64xbf16>, vector<64x128xbf16>, vector<16x128xf32> -> vector<16x128xf32>
    %c0_15 = arith.constant 0 : index
    %c0_16 = arith.constant 0 : index
    %19 = vector.load %arg7[%c0_15, %c0_16] : memref<1x128xf32, #tpu.memory_space<vmem>>, vector<1x128xf32>
    %20 = vector.broadcast %19 : vector<1x128xf32> to vector<16x128xf32>
    %21 = arith.addf %18, %20 : vector<16x128xf32>
    %c0_17 = arith.constant 0 : index
    %c0_18 = arith.constant 0 : index
    %22 = vector.load %arg8[%c0_17, %c0_18] : memref<16x128xf32, #tpu.memory_space<vmem>>, vector<16x128xf32>
    tpu.vector_store %arg8[%c0_17, %c0_18], %21 {strides = array<i32>} : memref<16x128xf32, #tpu.memory_space<vmem>>, vector<16x128xf32>,
    return
  }
  func.func @transform_0(%arg0: i32) -> (i32, i32) {
    %c0_i32 = arith.constant 0 : i32
    %c0_i32_0 = arith.constant 0 : i32
    return %arg0, %c0_i32 : i32, i32
  }
  func.func @transform_1(%arg0: i32) -> (i32, i32) {
    %c0_i32 = arith.constant 0 : i32
    %c0_i32_0 = arith.constant 0 : i32
    %c0_i32_1 = arith.constant 0 : i32
    return %c0_i32, %c0_i32_0 : i32, i32
  }
  func.func @transform_2(%arg0: i32) -> (i32, i32) {
    %c0_i32 = arith.constant 0 : i32
    %c0_i32_0 = arith.constant 0 : i32
    %c0_i32_1 = arith.constant 0 : i32
    return %c0_i32, %c0_i32_0 : i32, i32
  }
  func.func @transform_3(%arg0: i32) -> (i32, i32) {
    %c0_i32 = arith.constant 0 : i32
    %c0_i32_0 = arith.constant 0 : i32
    %c0_i32_1 = arith.constant 0 : i32
    return %c0_i32, %c0_i32_0 : i32, i32
  }
  func.func @transform_4(%arg0: i32) -> (i32, i32) {
    %c0_i32 = arith.constant 0 : i32
    %c0_i32_0 = arith.constant 0 : i32
    %c0_i32_1 = arith.constant 0 : i32
    return %c0_i32, %c0_i32_0 : i32, i32
  }
  func.func @transform_5(%arg0: i32) -> (i32, i32) {
    %c0_i32 = arith.constant 0 : i32
    %c0_i32_0 = arith.constant 0 : i32
    %c0_i32_1 = arith.constant 0 : i32
    return %c0_i32, %c0_i32_0 : i32, i32
  }
  func.func @transform_6(%arg0: i32) -> (i32, i32) {
    %c0_i32 = arith.constant 0 : i32
    %c0_i32_0 = arith.constant 0 : i32
    %c0_i32_1 = arith.constant 0 : i32
    return %c0_i32, %c0_i32_0 : i32, i32
  }
  func.func @transform_7(%arg0: i32) -> (i32, i32) {
    %c0_i32 = arith.constant 0 : i32
    %c0_i32_0 = arith.constant 0 : i32
    return %arg0, %c0_i32 : i32, i32
  }
}

</mosaic_0001>

<bundles_post_ra>
// kernel: tpu_custom_call.1
= control target key start
LH: loop header
LB: loop body
LE: loop exit
PB: predicated region body
PF: predicated region fallthrough
CT: control target
= control target key end

     0   :  { %12 = vsyncpa [#allocation3], 0  ;;  %s1444_s0 = inlined_call_operand.vmem [shape: bf16[16,896], index: 0, kind: input, shape index: {}]   ;;  %s1445_s1 = inlined_call_operand.hbm [shape: bf16[896,128], index: 1, kind: input, shape index: {}]   ;;  %s1446_s2 = inlined_call_operand.vmem [shape: f32[1,128], index: 2, kind: input, shape index: {}]   ;;  %s1447_s3 = inlined_call_operand.vmem [shape: bf16[128,64], index: 3, kind: input, shape index: {}]   ;;  %s1448_s4 = inlined_call_operand.vmem [shape: f32[1,64], index: 4, kind: input, shape index: {}]   ;;  %s1449_s5 = inlined_call_operand.vmem [shape: bf16[64,128], index: 5, kind: input, shape index: {}]   ;;  %s1450_s6 = inlined_call_operand.vmem [shape: f32[1,128], index: 6, kind: input, shape index: {}]   ;;  %s1451_s7 = inlined_call_operand.hbm [shape: f32[16,128], index: 7, kind: output, shape index: {}]  }
   0x1   :  { %13 = vsyncpa [#allocation4], 0  ;;  %s1280_s24 = smov [#allocation2]   ;;  %s1232_s28 = scalar_lea.hbm %s1445_s1, 7168 }
   0x2   :  { %s21_s25 = sshll.u32 %s1280_s24, 4  ;;  %p1233_p0 = scmp.ne.s32.totalorder %s1445_s1, %s1232_s28  ;;  %s22_s25 = int_to_ptr.vmem [resolvable:$true] %s21_s25 }
   0x3   :  { %p1236_p1 = scmp.lt.u32.totalorder %s1232_s28, %s1445_s1 }
   0x5   :  { %p1238_p2 = pnand %p1236_p1, %p1233_p0 }
   0x7   :  { %1241 = shalt.err (!%p1238_p2)
}
   0x8   :  { %s1242_s10 = scalar_lea.vmem %s22_s25, 7168  ;;  %p1247_p4 = scmp.lt.s32.totalorder %s22_s25, %s22_s25 }
   0x9   :  { %p1243_p3 = scmp.ne.s32.totalorder %s22_s25, %s1242_s10  ;;  %p1248_p5 = scmp.lt.s32.totalorder %s1242_s10, %s1242_s10 }
   0xb   :  { %p1249_p6 = por %p1248_p5, %p1247_p4 }
   0xd   :  { %p1250_p7 = pnand %p1249_p6, %p1243_p3 }
   0xf   :  { %1253 = shalt.err (!%p1250_p7)
}
  0x10   :  { %s1281_s11 = smov 64   ;;  %s1282_s12 = smov 4  }
  0x11   :  { %27 = dma.hbm_to_vmem [thread:$0]  %s1445_s1, 7168, %s22_s25, [#allocation3], %s1281_s11, %s1281_s11, %s1282_s12  }
  0x12   :  { %1276 = dma.done.wait [#allocation3], 7168  }
  0x13   :  { %1277 = vsyncadd [#allocation3], 4294960128  ;;  %v1154_v0 = vld [vmem:[#allocation2 + $0x40] sm:$0xff]   ;;  %v1158_v4 = vld [vmem:[#allocation2 + $0x48] sm:$0xff]   ;;  %v1283_v38 = vmov 0.0   ;;  %vm1284_vm0 = vmmov 0  }
  0x14   :  { %v1155_v1 = vld [vmem:[#allocation2] sm:$0xff]   ;;  %1005 = vmatprep.subr.bf16.mxu0 %v1154_v0  ;;  %v1159_v5 = vld [vmem:[#allocation2 + $0x8] sm:$0xff]   ;;  %v1162_v8 = vld [vmem:[#allocation2 + $0x50] sm:$0xff]   ;;  %vm862_vm1 = vcmask 523264  }
  0x15   :  { %v1156_v2 = vld [vmem:[#allocation2 + $0xc0] sm:$0xff]   ;;  %1006 = vmatpush3.bf16.msra.mxu0 %v1155_v1  ;;  %v1160_v6 = vld [vmem:[#allocation2 + $0xc8] sm:$0xff]   ;;  %v1163_v9 = vld [vmem:[#allocation2 + $0x10] sm:$0xff]  }
  0x16   :  { %v1157_v3 = vld [vmem:[#allocation2 + $0x80] sm:$0xff]   ;;  %1027 = vmatprep.subr.bf16.mxu1 %v1156_v2  ;;  %1007 = vmatprep.subr.bf16.mxu0 %v1158_v4  ;;  %v1161_v7 = vld [vmem:[#allocation2 + $0x88] sm:$0xff]   ;;  %v1164_v10 = vld [vmem:[#allocation2 + $0xd0] sm:$0xff]  }
  0x17   :  { %1028 = vmatpush3.bf16.msra.mxu1 %v1157_v3  ;;  %v1165_v11 = vld [vmem:[#allocation2 + $0x90] sm:$0xff]   ;;  %v1166_v12 = vld [vmem:[#allocation2 + $0x58] sm:$0xff]   ;;  %v1170_v16 = vld [vmem:[#allocation2 + $0x60] sm:$0xff]  }
  0x18   :  { %1029 = vmatprep.subr.bf16.mxu1 %v1160_v6  ;;  %v1167_v13 = vld [vmem:[#allocation2 + $0x18] sm:$0xff]   ;;  %v1171_v17 = vld [vmem:[#allocation2 + $0x20] sm:$0xff]   ;;  %v1174_v20 = vld [vmem:[#allocation2 + $0x68] sm:$0xff]  }
  0x19   :  { %1008 = vmatpush3.bf16.msra.mxu0 %v1159_v5  ;;  %v1168_v14 = vld [vmem:[#allocation2 + $0xd8] sm:$0xff]   ;;  %v1172_v18 = vld [vmem:[#allocation2 + $0xe0] sm:$0xff]   ;;  %v1175_v21 = vld [vmem:[#allocation2 + $0x28] sm:$0xff]  }
  0x1a   :  { %1009 = vmatprep.subr.bf16.mxu0 %v1162_v8  ;;  %v1169_v15 = vld [vmem:[#allocation2 + $0x98] sm:$0xff]   ;;  %v1173_v19 = vld [vmem:[#allocation2 + $0xa0] sm:$0xff]   ;;  %v1176_v22 = vld [vmem:[#allocation2 + $0xe8] sm:$0xff]  }
  0x1b   :  { %1030 = vmatpush3.bf16.msra.mxu1 %v1161_v7  ;;  %v1177_v23 = vld [vmem:[#allocation2 + $0xa8] sm:$0xff]   ;;  %v1178_v24 = vld [vmem:[#allocation2 + $0x70] sm:$0xff]   ;;  %v1182_v28 = vld [vmem:[#allocation2 + $0x78] sm:$0xff]  }
  0x1c   :  { %1031 = vmatprep.subr.bf16.mxu1 %v1164_v10  ;;  %v1179_v25 = vld [vmem:[#allocation2 + $0x30] sm:$0xff]   ;;  %v1183_v29 = vld [vmem:[#allocation2 + $0x38] sm:$0xff]   ;;  %v1187_v32 = vld [vmem:[%s1444_s0 + $0x4] ss:$28 sps:$4 sm:$0xff]  }
  0x1d   :  { %1010 = vmatpush3.bf16.msra.mxu0 %v1163_v9  ;;  %v1180_v26 = vld [vmem:[#allocation2 + $0xf0] sm:$0xff]   ;;  %v1184_v30 = vld [vmem:[#allocation2 + $0xf8] sm:$0xff]   ;;  %573 = vmatprep.mubr.bf16.mxu0 %v1187_v32  ;;  %v1189_v34 = vld [vmem:[#allocation2 + $0x140] sm:$0xff]  }
  0x1e   :  { %1011 = vmatprep.subr.bf16.mxu0 %v1166_v12  ;;  %v1181_v27 = vld [vmem:[#allocation2 + $0xb0] sm:$0xff]   ;;  %v1185_v31 = vld [vmem:[%s1444_s0] ss:$28 sps:$4 sm:$0xff]   ;;  %v1190_v35 = vld [vmem:[%s1444_s0 + $0x8] ss:$28 sps:$4 sm:$0xff]  }
  0x1f   :  { %1032 = vmatpush3.bf16.msra.mxu1 %v1165_v11  ;;  %v1188_v33 = vld [vmem:[#allocation2 + $0xb8] sm:$0xff]   ;;  %v1192_v36 = vld [vmem:[%s1444_s0 + $0xc] ss:$28 sps:$4 sm:$0xff]   ;;  %v1193_v37 = vld [vmem:[#allocation2 + $0x100] sm:$0xff]  }
  0x20   :  { %1033 = vmatprep.subr.bf16.mxu1 %v1168_v14  ;;  %614 = vmatprep.mubr.bf16.mxu1 %v1192_v36  ;;  %v1194_v39 = vld [vmem:[#allocation2 + $0x180] sm:$0xff]   ;;  %v1195_v40 = vld [vmem:[#allocation2 + $0x148] sm:$0xff]   ;;  %v1198_v43 = vld [vmem:[#allocation2 + $0x150] sm:$0xff]  }
  0x21   :  { %1012 = vmatpush3.bf16.msra.mxu0 %v1167_v13  ;;  %v1196_v41 = vld [vmem:[#allocation2 + $0x108] sm:$0xff]   ;;  %v1199_v44 = vld [vmem:[#allocation2 + $0x110] sm:$0xff]   ;;  %v1201_v46 = vld [vmem:[#allocation2 + $0x158] sm:$0xff]  }
  0x22   :  { %1013 = vmatprep.subr.bf16.mxu0 %v1170_v16  ;;  %v1197_v42 = vld [vmem:[#allocation2 + $0x188] sm:$0xff]   ;;  %v1200_v45 = vld [vmem:[#allocation2 + $0x190] sm:$0xff]   ;;  %v1202_v47 = vld [vmem:[#allocation2 + $0x118] sm:$0xff]  }
  0x23   :  { %1034 = vmatpush3.bf16.msra.mxu1 %v1169_v15  ;;  %v1203_v48 = vld [vmem:[#allocation2 + $0x198] sm:$0xff]   ;;  %v1204_v49 = vld [vmem:[#allocation2 + $0x160] sm:$0xff]   ;;  %v1207_v52 = vld [vmem:[#allocation2 + $0x168] sm:$0xff]  }
  0x24   :  { %1035 = vmatprep.subr.bf16.mxu1 %v1172_v18  ;;  %v1205_v50 = vld [vmem:[#allocation2 + $0x120] sm:$0xff]   ;;  %v1208_v53 = vld [vmem:[#allocation2 + $0x128] sm:$0xff]   ;;  %v1210_v55 = vld [vmem:[#allocation2 + $0x170] sm:$0xff]  }
  0x25   :  { %1014 = vmatpush3.bf16.msra.mxu0 %v1171_v17  ;;  %v1206_v51 = vld [vmem:[#allocation2 + $0x1a0] sm:$0xff]   ;;  %v1209_v54 = vld [vmem:[#allocation2 + $0x1a8] sm:$0xff]   ;;  %v1211_v56 = vld [vmem:[#allocation2 + $0x130] sm:$0xff]  }
  0x26   :  { %1015 = vmatprep.subr.bf16.mxu0 %v1174_v20  ;;  %v1212_v57 = vld [vmem:[#allocation2 + $0x1b0] sm:$0xff]   ;;  %v1213_v59 = vld [vmem:[#allocation2 + $0x178] sm:$0xff]   ;;  %v1220_v0 = vld [vmem:[%s1447_s3] sm:$0xff]  }
  0x27   :  { %1036 = vmatpush3.bf16.msra.mxu1 %v1173_v19  ;;  %v1217_v58 = vld [vmem:[%s1444_s0 + $0x14] ss:$28 sps:$4 sm:$0xff]   ;;  %v1214_v60 = vld [vmem:[#allocation2 + $0x138] sm:$0xff]   ;;  %v1221_v1 = vld [vmem:[%s1447_s3 + $0x8] sm:$0xff]  }
  0x28   :  { %1037 = vmatprep.subr.bf16.mxu1 %v1176_v22  ;;  %v1218_v61 = vld [vmem:[#allocation2 + $0x1b8] sm:$0xff]   ;;  %v1215_v62 = vld [vmem:[%s1444_s0 + $0x10] ss:$28 sps:$4 sm:$0xff]   ;;  %v1224_v4 = vld [vmem:[%s1447_s3 + $0x20] sm:$0xff]  }
  0x29   :  { %1016 = vmatpush3.bf16.msra.mxu0 %v1175_v21  ;;  %v1219_v63 = vld [vmem:[%s1444_s0 + $0x18] ss:$28 sps:$4 sm:$0xff]   ;;  %v1225_v5 = vld [vmem:[%s1447_s3 + $0x28] sm:$0xff]   ;;  %v1228_v8 = vld [vmem:[%s1449_s5] sm:$0xff]  }
  0x2a   :  { %1017 = vmatprep.subr.bf16.mxu0 %v1178_v24  ;;  %v1222_v2 = vld [vmem:[%s1447_s3 + $0x10] sm:$0xff]   ;;  %v1223_v3 = vld [vmem:[%s1447_s3 + $0x18] sm:$0xff]   ;;  %v1229_v9 = vld [vmem:[%s1449_s5 + $0x8] sm:$0xff]  }
  0x2b   :  { %1038 = vmatpush3.bf16.msra.mxu1 %v1177_v23  ;;  %v1226_v6 = vld [vmem:[%s1447_s3 + $0x30] sm:$0xff]   ;;  %v1227_v7 = vld [vmem:[%s1447_s3 + $0x38] sm:$0xff]   ;;  %v926_v11 = vld [vmem:[%s1446_s2] ss:$0 sm:$0xff] }
  0x2c   :  { %1039 = vmatprep.subr.bf16.mxu1 %v1180_v26 }
  0x2d   :  { %1018 = vmatpush3.bf16.msra.mxu0 %v1179_v25 }
  0x2e   :  { %1019 = vmatprep.subr.bf16.mxu0 %v1182_v28 }
  0x2f   :  { %1040 = vmatpush3.bf16.msra.mxu1 %v1181_v27 }
  0x30   :  { %1041 = vmatprep.subr.bf16.mxu1 %v1184_v30 }
  0x31   :  { %1020 = vmatpush3.bf16.msra.mxu0 %v1183_v29 }
  0x32   :  { %1049 = vmatprep.subr.bf16.mxu0 %v1189_v34 }
  0x33   :  { %1042 = vmatpush3.bf16.msra.mxu1 %v1188_v33 }
  0x34   :  { %574 = vmatmul.mubr.bf16.vlgmr.msra.gmra.mrb[0].mxu0 %v1185_v31  ;;  %1094 = vmatprep.subr.bf16.mxu1 %v1283_v38 }
  0x35   :  { %1050 = vmatpush3.bf16.msra.mxu0 %v1193_v37  ;;  %655 = vmatprep.mubr.bf16.mxu0 %v1217_v58 }
  0x36   :  { %615 = vmatmul.mubr.bf16.vlgmr.msra.gmra.mrb[0].mxu1 %v1190_v35  ;;  %1051 = vmatprep.subr.bf16.mxu0 %v1195_v40 }
  0x37   :  { %1095 = vmatpush3.bf16.msra.mxu1 %v1194_v39  ;;  %1110 = vmatprep.mubr.msk.bf16.mxu1 %vm1284_vm0, %v1283_v38 }
  0x38   :  { %1096 = vmatprep.subr.bf16.mxu1 %v1283_v38 }
  0x39   :  { %1052 = vmatpush3.bf16.msra.mxu0 %v1196_v41 }
  0x3a   :  { %1053 = vmatprep.subr.bf16.mxu0 %v1198_v43 }
  0x3b   :  { %1097 = vmatpush3.bf16.msra.mxu1 %v1197_v42 }
  0x3c   :  { %1098 = vmatprep.subr.bf16.mxu1 %v1283_v38 }
  0x3d   :  { %1054 = vmatpush3.bf16.msra.mxu0 %v1199_v44 }
  0x3e   :  { %1055 = vmatprep.subr.bf16.mxu0 %v1201_v46  ;;  %v1231_v46 = vld [vmem:[%s1449_s5 + $0x18] sm:$0xff]  }
  0x3f   :  { %1099 = vmatpush3.bf16.msra.mxu1 %v1200_v45  ;;  %v1230_v45 = vld [vmem:[%s1449_s5 + $0x10] sm:$0xff]   ;;  %s1285_s5 = smov [#allocation5]  }
  0x40   :  { %1100 = vmatprep.subr.bf16.mxu1 %v1283_v38  ;;  %s914_s30 = sshll.u32 %s1285_s5, 4  ;;  %s915_s30 = int_to_ptr.vmem [resolvable:$true] %s914_s30 }
  0x41   :  { %1056 = vmatpush3.bf16.msra.mxu0 %v1202_v47  ;;  %v990_v47 = vld [vmem:[%s1448_s4] ss:$0 sm:$0xff]  ;;  %s1254_s4 = scalar_lea.vmem %s915_s30, 256  ;;  %p1259_p9 = scmp.lt.s32.totalorder %s915_s30, %s915_s30 }
  0x42   :  { %1057 = vmatprep.subr.bf16.mxu0 %v1204_v49  ;;  %p1255_p8 = scmp.ne.s32.totalorder %s915_s30, %s1254_s4  ;;  %p1260_p10 = scmp.lt.s32.totalorder %s1254_s4, %s1254_s4 }
  0x43   :  { %1101 = vmatpush3.bf16.msra.mxu1 %v1203_v48 }
  0x44   :  { %1102 = vmatprep.subr.bf16.mxu1 %v1283_v38  ;;  %p1261_p11 = por %p1260_p10, %p1259_p9 }
  0x45   :  { %1058 = vmatpush3.bf16.msra.mxu0 %v1205_v50 }
  0x46   :  { %1059 = vmatprep.subr.bf16.mxu0 %v1207_v52  ;;  %p1262_p12 = pnand %p1261_p11, %p1255_p8 }
  0x47   :  { %1103 = vmatpush3.bf16.msra.mxu1 %v1206_v51 }
  0x48   :  { %1104 = vmatprep.subr.bf16.mxu1 %v1283_v38 }
  0x49   :  { %1060 = vmatpush3.bf16.msra.mxu0 %v1208_v53 }
  0x4a   :  { %1061 = vmatprep.subr.bf16.mxu0 %v1210_v55 }
  0x4b   :  { %1105 = vmatpush3.bf16.msra.mxu1 %v1209_v54 }
  0x4c   :  { %1106 = vmatprep.subr.bf16.mxu1 %v1283_v38 }
  0x4d   :  { %1062 = vmatpush3.bf16.msra.mxu0 %v1211_v56 }
  0x4e   :  { %1063 = vmatprep.subr.bf16.mxu0 %v1213_v59 }
  0x4f   :  { %1107 = vmatpush3.bf16.msra.mxu1 %v1212_v57 }
  0x50   :  { %1108 = vmatprep.subr.bf16.mxu1 %v1283_v38 }
  0x51   :  { %1064 = vmatpush3.bf16.msra.mxu0 %v1214_v60 }
  0x52   :  { %1114 = vmatprep.subr.bf16.mxu0 %v1283_v38 }
  0x53   :  { %1109 = vmatpush3.bf16.msra.mxu1 %v1218_v61 }
  0x54   :  { %1134 = vmatprep.subr.bf16.mxu1 %v1283_v38  ;;  %656 = vmatmul.mubr.bf16.vlgmr.msra.gmra.mrb[4].mxu0 %v1215_v62 }
  0x55   :  { %1130 = vmatprep.mubr.msk.bf16.mxu0 %vm1284_vm0, %v1283_v38  ;;  %1115 = vmatpush3.bf16.msra.mxu0 %v1220_v0 }
  0x56   :  { %1111 = vmatmul.mubr.bf16.vlgmr.msra.gmra.mrb[4].mxu1 %v1219_v63  ;;  %1116 = vmatprep.subr.bf16.mxu0 %v1283_v38 }
  0x57   :  { %1142 = vmatprep.mubr.msk.bf16.mxu1 %vm1284_vm0, %v1283_v38  ;;  %1135 = vmatpush3.bf16.msra.mxu1 %v1228_v8 }
  0x58   :  { %1136 = vmatprep.subr.bf16.mxu1 %v1283_v38 }
  0x59   :  { %1117 = vmatpush3.bf16.msra.mxu0 %v1221_v1 }
  0x5a   :  { %1118 = vmatprep.subr.bf16.mxu0 %v1283_v38 }
  0x5b   :  { %1137 = vmatpush3.bf16.msra.mxu1 %v1229_v9 }
  0x5c   :  { %1138 = vmatprep.subr.bf16.mxu1 %v1283_v38 }
  0x5d   :  { %1119 = vmatpush3.bf16.msra.mxu0 %v1222_v2 }
  0x5e   :  { %1120 = vmatprep.subr.bf16.mxu0 %v1283_v38 }
  0x5f   :  { %1139 = vmatpush3.bf16.msra.mxu1 %v1230_v45 }
  0x60   :  { %1140 = vmatprep.subr.bf16.mxu1 %v1283_v38 }
  0x61   :  { %1121 = vmatpush3.bf16.msra.mxu0 %v1223_v3 }
  0x62   :  { %1122 = vmatprep.subr.bf16.mxu0 %v1283_v38 }
  0x63   :  { %1141 = vmatpush3.bf16.msra.mxu1 %v1231_v46 }
  0x65   :  { %1123 = vmatpush3.bf16.msra.mxu0 %v1224_v4 }
  0x66   :  { %1124 = vmatprep.subr.bf16.mxu0 %v1283_v38 }
  0x69   :  { %1125 = vmatpush3.bf16.msra.mxu0 %v1225_v5 }
  0x6a   :  { %1126 = vmatprep.subr.bf16.mxu0 %v1283_v38 }
  0x6d   :  { %1127 = vmatpush3.bf16.msra.mxu0 %v1226_v6 }
  0x6e   :  { %1128 = vmatprep.subr.bf16.mxu0 %v1283_v38  ;;  %v999_v38 = vld [vmem:[%s1450_s6] ss:$0 sm:$0xff] }
  0x71   :  { %1129 = vmatpush3.bf16.msra.mxu0 %v1227_v7 }
 0x107   :  { %v1021_v10 = vpop.f32.mrb[0].mxu0 }
 0x108   :  { %v1022_v12 = vpop.f32.mrb[1].mxu0 }
 0x109   :  { %v1023_v13 = vadd.f32 %v1022_v12, %v1021_v10  ;;  %v1024_v14 = vpop.f32.mrb[2].mxu0  ;;  %v1043_v15 = vpop.f32.mrb[0].mxu1 }
 0x10a   :  { %v1025_v16 = vpop.f32.mrb[3].mxu0  ;;  %v1044_v19 = vpop.f32.mrb[1].mxu1 }
 0x10b   :  { %v576_v17 = vadd.f32 %v1023_v13, %v926_v11  ;;  %v1026_v18 = vadd.f32 %v1025_v16, %v1024_v14  ;;  %v1045_v20 = vadd.f32 %v1044_v19, %v1043_v15  ;;  %v1046_v21 = vpop.f32.mrb[2].mxu1 }
 0x10c   :  { %v1047_v23 = vpop.f32.mrb[3].mxu1 }
 0x10d   :  { %v579_v22 = vadd.f32 %v1026_v18, %v926_v11  ;;  %v617_v24 = vadd.f32 %v1045_v20, %v576_v17  ;;  %v1048_v25 = vadd.f32 %v1047_v23, %v1046_v21 }
 0x10f   :  { %v620_v26 = vadd.f32 %v1048_v25, %v579_v22 }
 0x127   :  { %v1065_v27 = vpop.f32.mrb[4].mxu0 }
 0x128   :  { %v1066_v28 = vpop.f32.mrb[5].mxu0 }
 0x129   :  { %v698_v29 = vpop.f32.mrb[4].mxu1  ;;  %v1067_v30 = vadd.f32 %v1066_v28, %v1065_v27  ;;  %v1068_v31 = vpop.f32.mrb[6].mxu0 }
 0x12a   :  { %v1112_v32 = vpop.f32.mrb[5].mxu1  ;;  %v1069_v33 = vpop.f32.mrb[7].mxu0 }
 0x12b   :  { %v701_v34 = vpop.f32.mrb[6].mxu1  ;;  %v658_v35 = vadd.f32 %v1067_v30, %v617_v24  ;;  %v1070_v36 = vadd.f32 %v1069_v33, %v1068_v31 }
 0x12c   :  { %v1113_v37 = vpop.f32.mrb[7].mxu1 }
 0x12d   :  { %v699_v39 = vadd.f32 %v698_v29, %v658_v35  ;;  %v661_v40 = vadd.f32 %v1070_v36, %v620_v26 }
 0x12f   :  { %v702_v41 = vadd.f32 %v701_v34, %v661_v40  ;;  %v705_v42 = vmax.f32 %v699_v39, 0.0 }
 0x131   :  { %v706_v43 = vmax.f32 %v702_v41, 0.0 }
 0x133   :  { %v707_v44 = vpack.c.bf16 %v706_v43, %v705_v42 }
 0x135   :  { %1131 = vmatmul.mubr.bf16.vlgmr.msra.gmra.mrb[8].mxu0 %v707_v44 }
 0x208   :  { %v813_v48 = vpop.f32.mrb[8].mxu0 }
 0x209   :  { %v814_v49 = vadd.f32 %v990_v47, %v813_v48  ;;  %v1132_v50 = vpop.f32.mrb[9].mxu0 }
 0x20a   :  { %v816_v51 = vpop.f32.mrb[10].mxu0 }
 0x20b   :  { %v817_v52 = vadd.f32 %v990_v47, %v816_v51  ;;  %v1133_v53 = vpop.f32.mrb[11].mxu0  ;;  %v820_v54 = vmax.f32 %v814_v49, 0.0 }
 0x20d   :  { %v821_v55 = vmax.f32 %v817_v52, 0.0 }
 0x20f   :  { %v822_v56 = vpack.c.bf16 %v821_v55, %v820_v54 }
 0x211   :  { %1143 = vmatmul.mubr.msk.bf16.vlgmr.msra.gmra.mrb[8].mxu1 %vm862_vm1, %v822_v56 }
 0x2e4   :  { %v900_v57 = vpop.f32.mrb[8].mxu1 }
 0x2e5   :  { %v901_v58 = vadd.f32 %v999_v38, %v900_v57  ;;  %v1144_v59 = vpop.f32.mrb[9].mxu1 }
 0x2e6   :  { %v903_v60 = vpop.f32.mrb[10].mxu1 }
 0x2e7   :  { %907 = vst [vmem:[#allocation5] sm:$0xff] %v901_v58  ;;  %v904_v61 = vadd.f32 %v999_v38, %v903_v60  ;;  %v1145_v62 = vpop.f32.mrb[11].mxu1 }
 0x2e9   :  { %908 = vst [vmem:[#allocation5 + $0x8] sm:$0xff] %v904_v61 }
 0x2ea   :  { %1265 = shalt.err (!%p1262_p12)
}
 0x2eb   :  { %s1266_s9 = scalar_lea.hbm %s1451_s7, 256 }
 0x2ec   :  { %p1267_p13 = scmp.ne.s32.totalorder %s1451_s7, %s1266_s9  ;;  %p1270_p0 = scmp.lt.u32.totalorder %s1266_s9, %s1451_s7 }
 0x2ee   :  { %p1272_p1 = pnand %p1270_p0, %p1267_p13 }
 0x2f0   :  { %1275 = shalt.err (!%p1272_p1)
}
 0x2f1   :  { %s1286_s14 = smov 128   ;;  %s1287_s1 = smov 8  }
 0x2f2   :  { %920 = dma.vmem_to_hbm [thread:$0]  %s915_s30, 256, %s1451_s7, [#allocation4], %s1286_s14, %s1286_s14, %s1287_s1  }
 0x2f3   :  { %1278 = dma.done.wait [#allocation4], 256  }
 0x2f4   :  { %1279 = vsyncadd [#allocation4], 4294967040 }
 0x2f5   :  { %924 = vsyncpa [#allocation3], 1 }
 0x2f6   :  { %925 = vsyncpa [#allocation4], 1 }

</bundles_post_ra>
